<compile_context>
chip_gen: v7x
topology: tpu7x:2x2x1
jax: 0.10.0
libtpu: 0.0.40
codegen_flags: <defaults>
</compile_context>

<pallas_src>
import jax
import jax.numpy as jnp
from jax.experimental import pallas as pl
from jax.experimental.pallas import tpu as pltpu


def _cdiv(a, b):
    return (a + b - 1) // b


def _round_up(x, m):
    return _cdiv(x, m) * m


def _vmem_limit_bytes():
    # ~75% of physical VMEM; falls back to a conservative 48 MiB.
    try:
        cap = pltpu.get_tpu_info().vmem_capacity_bytes
        return int(cap * 3 // 4)
    except Exception:
        return 48 * 1024 * 1024


def _pick_row_tile(rows, target):
    """Row tile: multiple of 8, close to `target`, bounded padding."""
    rows8 = _round_up(max(rows, 1), 8)
    n_tiles = max(1, _cdiv(rows8, target))
    return _round_up(_cdiv(rows8, n_tiles), 8)


# ---------------------------------------------------------------------------
# Kernel 1: fully fused MLP  (o = tanh(...tanh(x @ w1 + b1)... @ wn + bn))
# Grid over row tiles; weights/biases resident (constant index_map).
# ---------------------------------------------------------------------------
def _make_mlp_kernel(n_layers):
    def kernel(x_ref, *refs):
        o_ref = refs[-1]
        h = x_ref[...]
        for i in range(n_layers):
            w = refs[2 * i][...]
            b = refs[2 * i + 1][...]
            h = jnp.tanh(jnp.dot(h, w, preferred_element_type=jnp.float32) + b)
        o_ref[...] = h.astype(o_ref.dtype)
    return kernel


def fused_mlp(x2d, params, *, target_tile_rows=512):
    rows, d_in = x2d.shape
    out_dim = params[-1][0].shape[1]
    n_layers = len(params)

    tile = _pick_row_tile(rows, target_tile_rows)
    rows_p = _round_up(rows, tile)
    if rows_p != rows:
        x2d = jnp.pad(x2d, ((0, rows_p - rows), (0, 0)))

    in_specs = [pl.BlockSpec((tile, d_in), lambda i: (i, 0))]
    args = [x2d]
    for (w, b) in params:
        in_specs.append(pl.BlockSpec(w.shape, lambda i: (0, 0)))   # resident
        in_specs.append(pl.BlockSpec(b.shape, lambda i: (0, 0)))   # resident
        args.extend((w, b))

    flops = sum(2 * rows_p * w.shape[0] * w.shape[1] for (w, _) in params)
    transc = sum(rows_p * w.shape[1] for (w, _) in params)
    bytes_acc = 4 * (rows_p * d_in
                     + sum(w.size + b.size for (w, b) in params)
                     + rows_p * out_dim)

    out = pl.pallas_call(
        _make_mlp_kernel(n_layers),
        out_shape=jax.ShapeDtypeStruct((rows_p, out_dim), jnp.float32),
        grid=(rows_p // tile,),
        in_specs=in_specs,
        out_specs=pl.BlockSpec((tile, out_dim), lambda i: (i, 0)),
        compiler_params=pltpu.CompilerParams(
            dimension_semantics=("parallel",),
            vmem_limit_bytes=_vmem_limit_bytes()),
        cost_estimate=pl.CostEstimate(
            flops=int(flops), transcendentals=int(transc),
            bytes_accessed=int(bytes_acc)),
    )(*args)
    return out[:rows]


# ---------------------------------------------------------------------------
# Kernel 2: branch_p MLP fused with the combine / trunk contraction.
#   out[r, n] = sum_h MLP_p(x_flat)[r, h] * yg_flat[r, h] * y_tr_t[h, n]
# Grid: (row tiles, N tiles).  Weights/biases resident; y_tr^T tiled over N.
# ---------------------------------------------------------------------------
def _make_combine_kernel(n_layers):
    def kernel(x_ref, yg_ref, *refs):
        o_ref = refs[-1]
        yt = refs[-2][...]                        # (H, tn) trunk^T block
        h = x_ref[...]                            # (tile_r, d_p) flattened rows
        for i in range(n_layers):
            w = refs[2 * i][...]
            b = refs[2 * i + 1][...]
            h = jnp.tanh(jnp.dot(h, w, preferred_element_type=jnp.float32) + b)
        y = h * yg_ref[...]                       # per-row branch_g scaling
        o_ref[...] = jnp.dot(y, yt,
                             preferred_element_type=jnp.float32).astype(o_ref.dtype)
    return kernel


def branch_p_combine(x_pace, y_br_g, params_p, y_tr, *,
                     target_tile_rows=512, target_tile_n=512):
    M, P, d_p = x_pace.shape
    N, H = y_tr.shape
    n_layers = len(params_p)
    rows = M * P

    # Flatten (M, P) -> one row axis; broadcast y_br_g to match rows.
    x_flat = x_pace.reshape(rows, d_p)
    yg_flat = jnp.broadcast_to(y_br_g[:, None, :], (M, P, H)).reshape(rows, H)

    tile_r = _pick_row_tile(rows, target_tile_rows)
    rows_p = _round_up(rows, tile_r)
    if rows_p != rows:
        x_flat = jnp.pad(x_flat, ((0, rows_p - rows), (0, 0)))
        yg_flat = jnp.pad(yg_flat, ((0, rows_p - rows), (0, 0)))

    # Lane-dense output: pad N to a multiple of 128 (zero columns, sliced off
    # after), and transpose y_tr once so the contraction is (rows, H) @ (H, tn).
    N_pad = _round_up(N, 128)
    y_tr_t = jnp.transpose(y_tr)                         # (H, N)
    if N_pad != N:
        y_tr_t = jnp.pad(y_tr_t, ((0, 0), (0, N_pad - N)))
    tn = min(target_tile_n, N_pad)                       # multiple of 128

    grid = (rows_p // tile_r, N_pad // tn)

    in_specs = [
        pl.BlockSpec((tile_r, d_p), lambda i, j: (i, 0)),
        pl.BlockSpec((tile_r, H), lambda i, j: (i, 0)),
    ]
    args = [x_flat, yg_flat]
    for (w, b) in params_p:
        in_specs.append(pl.BlockSpec(w.shape, lambda i, j: (0, 0)))  # resident
        in_specs.append(pl.BlockSpec(b.shape, lambda i, j: (0, 0)))  # resident
        args.extend((w, b))
    in_specs.append(pl.BlockSpec((H, tn), lambda i, j: (0, j)))       # N-tiled
    args.append(y_tr_t)

    mlp_flops_row = sum(2 * w.shape[0] * w.shape[1] for (w, _) in params_p)
    flops = rows_p * (mlp_flops_row + H + 2 * H * N_pad)
    transc = rows_p * sum(w.shape[1] for (w, _) in params_p)
    bytes_acc = 4 * (rows_p * (d_p + H + N_pad)
                     + sum(w.size + b.size for (w, b) in params_p)
                     + H * N_pad)

    out = pl.pallas_call(
        _make_combine_kernel(n_layers),
        out_shape=jax.ShapeDtypeStruct((rows_p, N_pad), jnp.float32),
        grid=grid,
        in_specs=in_specs,
        out_specs=pl.BlockSpec((tile_r, tn), lambda i, j: (i, j)),
        compiler_params=pltpu.CompilerParams(
            dimension_semantics=("parallel", "parallel"),
            vmem_limit_bytes=_vmem_limit_bytes()),
        cost_estimate=pl.CostEstimate(
            flops=int(flops), transcendentals=int(transc),
            bytes_accessed=int(bytes_acc)),
    )(*args)

    return out[:rows, :N].reshape(M, P, N)


# ---------------------------------------------------------------------------
# Parameter setup + forward (glue)
# ---------------------------------------------------------------------------
def init_mlp(key, dims):
    """PyTorch-style Linear init (uniform +-1/sqrt(fan_in)); deterministic."""
    params = []
    for i in range(1, len(dims)):
        key, kw, kb = jax.random.split(key, 3)
        bound = 1.0 / (dims[i - 1] ** 0.5)
        w = jax.random.uniform(kw, (dims[i - 1], dims[i]), jnp.float32, -bound, bound)
        b = jax.random.uniform(kb, (1, dims[i]), jnp.float32, -bound, bound)
        params.append((w, b))
    return params, key


@jax.jit
def opnn_forward(params_g, params_p, params_t, f_g, x_pace, x):
    y_br_g = fused_mlp(f_g, params_g)                  # (M, H)
    y_tr = fused_mlp(x, params_t)                      # (N, H)
    return branch_p_combine(x_pace, y_br_g, params_p, y_tr)   # (M, P, N)


def opnn_forward_ref(params_g, params_p, params_t, f_g, x_pace, x):
    """Pure-JAX reference for correctness checking."""
    def mlp(z, params):
        for (w, b) in params:
            z = jnp.tanh(z @ w + b)
        return z
    y_br_g = mlp(f_g, params_g)
    M, P, dp = x_pace.shape
    y_br_p = mlp(x_pace.reshape(M * P, dp), params_p).reshape(M, P, -1)
    y_ = y_br_p * y_br_g[:, None]
    y_tr = mlp(x, params_t)
    return jnp.einsum('ijk,lk->ijl', y_, y_tr)


if __name__ == "__main__":
    # Shapes consistent with the module's forward:
    #   f_g:    (M, dim_f)       branch_g_dim = [dim_f, 32, H]
    #   x_pace: (M, P, dim_p)    branch_p_dim = [dim_p, 32, H]
    #   x:      (N, dim_x)       trunk_dim    = [dim_x, 32, H]
    M, P, N, H = 4, 8, 16, 32
    branch_g_dim = [8, 32, H]
    branch_p_dim = [4, 32, H]
    trunk_dim = [2, 32, H]

    key = jax.random.PRNGKey(0)
    params_g, key = init_mlp(key, branch_g_dim)
    params_p, key = init_mlp(key, branch_p_dim)
    params_t, key = init_mlp(key, trunk_dim)

    key, k1, k2, k3 = jax.random.split(key, 4)
    f_g = jax.random.normal(k1, (M, branch_g_dim[0]), jnp.float32)
    x_pace = jax.random.normal(k2, (M, P, branch_p_dim[0]), jnp.float32)
    x = jax.random.normal(k3, (N, trunk_dim[0]), jnp.float32)

    y_out = opnn_forward(params_g, params_p, params_t, f_g, x_pace, x)
    jax.block_until_ready(y_out)

    y_ref = opnn_forward_ref(params_g, params_p, params_t, f_g, x_pace, x)
    assert y_out.shape == (M, P, N)
    assert jnp.allclose(y_out, y_ref, atol=1e-5, rtol=1e-5)

    print("KERNEL_OK")
</pallas_src>

<mosaic_0001>
module attributes {stable_mosaic.version = 11 : i64} {
  func.func @kernel(%arg0: i32, %arg1: memref<16x2xf32, #tpu.memory_space<vmem>>, %arg2: memref<2x32xf32, #tpu.memory_space<vmem>>, %arg3: memref<1x32xf32, #tpu.memory_space<vmem>>, %arg4: memref<32x32xf32, #tpu.memory_space<vmem>>, %arg5: memref<1x32xf32, #tpu.memory_space<vmem>>, %arg6: memref<16x32xf32, #tpu.memory_space<vmem>>) attributes {dimension_semantics = [#tpu.dimension_semantics<parallel>], iteration_bounds = array<i64: 1>, scalar_prefetch = 0 : i64, scratch_operands = 0 : i64, tpu.core_type = #tpu.core_type<tc>, window_params = [{transform_indices = @transform_0, window_bounds = array<i64: 16, 2>}, {pipeline_mode = #tpu.pipeline_mode<synchronous>, transform_indices = @transform_1, window_bounds = array<i64: 2, 32>}, {pipeline_mode = #tpu.pipeline_mode<synchronous>, transform_indices = @transform_2, window_bounds = array<i64: 1, 32>}, {pipeline_mode = #tpu.pipeline_mode<synchronous>, transform_indices = @transform_3, window_bounds = array<i64: 32, 32>}, {pipeline_mode = #tpu.pipeline_mode<synchronous>, transform_indices = @transform_4, window_bounds = array<i64: 1, 32>}, {transform_indices = @transform_5, window_bounds = array<i64: 16, 32>}]} {
    %c0 = arith.constant 0 : index
    %c0_0 = arith.constant 0 : index
    %0 = vector.load %arg1[%c0, %c0_0] : memref<16x2xf32, #tpu.memory_space<vmem>>, vector<16x2xf32>
    %c0_1 = arith.constant 0 : index
    %c0_2 = arith.constant 0 : index
    %1 = vector.load %arg2[%c0_1, %c0_2] : memref<2x32xf32, #tpu.memory_space<vmem>>, vector<2x32xf32>
    %c0_3 = arith.constant 0 : index
    %c0_4 = arith.constant 0 : index
    %2 = vector.load %arg3[%c0_3, %c0_4] : memref<1x32xf32, #tpu.memory_space<vmem>>, vector<1x32xf32>
    %cst = arith.constant dense<0.000000e+00> : vector<16x32xf32>
    %3 = tpu.matmul %0, %1, %cst {dimension_numbers = #tpu.dot_dimension_numbers<[1], [0], [0], [1], [0, 0, 1, 1], [], []>} : vector<16x2xf32>, vector<2x32xf32>, vector<16x32xf32> -> vector<16x32xf32>
    %4 = vector.broadcast %2 : vector<1x32xf32> to vector<16x32xf32>
    %5 = arith.addf %3, %4 : vector<16x32xf32>
    %6 = math.tanh %5 : vector<16x32xf32>
    %c0_5 = arith.constant 0 : index
    %c0_6 = arith.constant 0 : index
    %7 = vector.load %arg4[%c0_5, %c0_6] : memref<32x32xf32, #tpu.memory_space<vmem>>, vector<32x32xf32>
    %c0_7 = arith.constant 0 : index
    %c0_8 = arith.constant 0 : index
    %8 = vector.load %arg5[%c0_7, %c0_8] : memref<1x32xf32, #tpu.memory_space<vmem>>, vector<1x32xf32>
    %cst_9 = arith.constant dense<0.000000e+00> : vector<16x32xf32>
    %9 = tpu.matmul %6, %7, %cst_9 {dimension_numbers = #tpu.dot_dimension_numbers<[1], [0], [0], [1], [0, 0, 1, 1], [], []>} : vector<16x32xf32>, vector<32x32xf32>, vector<16x32xf32> -> vector<16x32xf32>
    %10 = vector.broadcast %8 : vector<1x32xf32> to vector<16x32xf32>
    %11 = arith.addf %9, %10 : vector<16x32xf32>
    %12 = math.tanh %11 : vector<16x32xf32>
    %c0_10 = arith.constant 0 : index
    %c0_11 = arith.constant 0 : index
    %13 = vector.load %arg6[%c0_10, %c0_11] : memref<16x32xf32, #tpu.memory_space<vmem>>, vector<16x32xf32>
    tpu.vector_store %arg6[%c0_10, %c0_11], %12 {strides = array<i32>} : memref<16x32xf32, #tpu.memory_space<vmem>>, vector<16x32xf32>,
    return
  }
  func.func @transform_0(%arg0: i32) -> (i32, i32) {
    %c0_i32 = arith.constant 0 : i32
    %c0_i32_0 = arith.constant 0 : i32
    return %arg0, %c0_i32 : i32, i32
  }
  func.func @transform_1(%arg0: i32) -> (i32, i32) {
    %c0_i32 = arith.constant 0 : i32
    %c0_i32_0 = arith.constant 0 : i32
    %c0_i32_1 = arith.constant 0 : i32
    return %c0_i32, %c0_i32_0 : i32, i32
  }
  func.func @transform_2(%arg0: i32) -> (i32, i32) {
    %c0_i32 = arith.constant 0 : i32
    %c0_i32_0 = arith.constant 0 : i32
    %c0_i32_1 = arith.constant 0 : i32
    return %c0_i32, %c0_i32_0 : i32, i32
  }
  func.func @transform_3(%arg0: i32) -> (i32, i32) {
    %c0_i32 = arith.constant 0 : i32
    %c0_i32_0 = arith.constant 0 : i32
    %c0_i32_1 = arith.constant 0 : i32
    return %c0_i32, %c0_i32_0 : i32, i32
  }
  func.func @transform_4(%arg0: i32) -> (i32, i32) {
    %c0_i32 = arith.constant 0 : i32
    %c0_i32_0 = arith.constant 0 : i32
    %c0_i32_1 = arith.constant 0 : i32
    return %c0_i32, %c0_i32_0 : i32, i32
  }
  func.func @transform_5(%arg0: i32) -> (i32, i32) {
    %c0_i32 = arith.constant 0 : i32
    %c0_i32_0 = arith.constant 0 : i32
    return %arg0, %c0_i32 : i32, i32
  }
}

module attributes {stable_mosaic.version = 11 : i64} {
  func.func @kernel(%arg0: i32, %arg1: memref<8x8xf32, #tpu.memory_space<vmem>>, %arg2: memref<8x32xf32, #tpu.memory_space<vmem>>, %arg3: memref<1x32xf32, #tpu.memory_space<vmem>>, %arg4: memref<32x32xf32, #tpu.memory_space<vmem>>, %arg5: memref<1x32xf32, #tpu.memory_space<vmem>>, %arg6: memref<8x32xf32, #tpu.memory_space<vmem>>) attributes {dimension_semantics = [#tpu.dimension_semantics<parallel>], iteration_bounds = array<i64: 1>, scalar_prefetch = 0 : i64, scratch_operands = 0 : i64, tpu.core_type = #tpu.core_type<tc>, window_params = [{transform_indices = @transform_0, window_bounds = array<i64: 8, 8>}, {pipeline_mode = #tpu.pipeline_mode<synchronous>, transform_indices = @transform_1, window_bounds = array<i64: 8, 32>}, {pipeline_mode = #tpu.pipeline_mode<synchronous>, transform_indices = @transform_2, window_bounds = array<i64: 1, 32>}, {pipeline_mode = #tpu.pipeline_mode<synchronous>, transform_indices = @transform_3, window_bounds = array<i64: 32, 32>}, {pipeline_mode = #tpu.pipeline_mode<synchronous>, transform_indices = @transform_4, window_bounds = array<i64: 1, 32>}, {transform_indices = @transform_5, window_bounds = array<i64: 8, 32>}]} {
    %c0 = arith.constant 0 : index
    %c0_0 = arith.constant 0 : index
    %0 = vector.load %arg1[%c0, %c0_0] : memref<8x8xf32, #tpu.memory_space<vmem>>, vector<8x8xf32>
    %c0_1 = arith.constant 0 : index
    %c0_2 = arith.constant 0 : index
    %1 = vector.load %arg2[%c0_1, %c0_2] : memref<8x32xf32, #tpu.memory_space<vmem>>, vector<8x32xf32>
    %c0_3 = arith.constant 0 : index
    %c0_4 = arith.constant 0 : index
    %2 = vector.load %arg3[%c0_3, %c0_4] : memref<1x32xf32, #tpu.memory_space<vmem>>, vector<1x32xf32>
    %cst = arith.constant dense<0.000000e+00> : vector<8x32xf32>
    %3 = tpu.matmul %0, %1, %cst {dimension_numbers = #tpu.dot_dimension_numbers<[1], [0], [0], [1], [0, 0, 1, 1], [], []>} : vector<8x8xf32>, vector<8x32xf32>, vector<8x32xf32> -> vector<8x32xf32>
    %4 = vector.broadcast %2 : vector<1x32xf32> to vector<8x32xf32>
    %5 = arith.addf %3, %4 : vector<8x32xf32>
    %6 = math.tanh %5 : vector<8x32xf32>
    %c0_5 = arith.constant 0 : index
    %c0_6 = arith.constant 0 : index
    %7 = vector.load %arg4[%c0_5, %c0_6] : memref<32x32xf32, #tpu.memory_space<vmem>>, vector<32x32xf32>
    %c0_7 = arith.constant 0 : index
    %c0_8 = arith.constant 0 : index
    %8 = vector.load %arg5[%c0_7, %c0_8] : memref<1x32xf32, #tpu.memory_space<vmem>>, vector<1x32xf32>
    %cst_9 = arith.constant dense<0.000000e+00> : vector<8x32xf32>
    %9 = tpu.matmul %6, %7, %cst_9 {dimension_numbers = #tpu.dot_dimension_numbers<[1], [0], [0], [1], [0, 0, 1, 1], [], []>} : vector<8x32xf32>, vector<32x32xf32>, vector<8x32xf32> -> vector<8x32xf32>
    %10 = vector.broadcast %8 : vector<1x32xf32> to vector<8x32xf32>
    %11 = arith.addf %9, %10 : vector<8x32xf32>
    %12 = math.tanh %11 : vector<8x32xf32>
    %c0_10 = arith.constant 0 : index
    %c0_11 = arith.constant 0 : index
    %13 = vector.load %arg6[%c0_10, %c0_11] : memref<8x32xf32, #tpu.memory_space<vmem>>, vector<8x32xf32>
    tpu.vector_store %arg6[%c0_10, %c0_11], %12 {strides = array<i32>} : memref<8x32xf32, #tpu.memory_space<vmem>>, vector<8x32xf32>,
    return
  }
  func.func @transform_0(%arg0: i32) -> (i32, i32) {
    %c0_i32 = arith.constant 0 : i32
    %c0_i32_0 = arith.constant 0 : i32
    return %arg0, %c0_i32 : i32, i32
  }
  func.func @transform_1(%arg0: i32) -> (i32, i32) {
    %c0_i32 = arith.constant 0 : i32
    %c0_i32_0 = arith.constant 0 : i32
    %c0_i32_1 = arith.constant 0 : i32
    return %c0_i32, %c0_i32_0 : i32, i32
  }
  func.func @transform_2(%arg0: i32) -> (i32, i32) {
    %c0_i32 = arith.constant 0 : i32
    %c0_i32_0 = arith.constant 0 : i32
    %c0_i32_1 = arith.constant 0 : i32
    return %c0_i32, %c0_i32_0 : i32, i32
  }
  func.func @transform_3(%arg0: i32) -> (i32, i32) {
    %c0_i32 = arith.constant 0 : i32
    %c0_i32_0 = arith.constant 0 : i32
    %c0_i32_1 = arith.constant 0 : i32
    return %c0_i32, %c0_i32_0 : i32, i32
  }
  func.func @transform_4(%arg0: i32) -> (i32, i32) {
    %c0_i32 = arith.constant 0 : i32
    %c0_i32_0 = arith.constant 0 : i32
    %c0_i32_1 = arith.constant 0 : i32
    return %c0_i32, %c0_i32_0 : i32, i32
  }
  func.func @transform_5(%arg0: i32) -> (i32, i32) {
    %c0_i32 = arith.constant 0 : i32
    %c0_i32_0 = arith.constant 0 : i32
    return %arg0, %c0_i32 : i32, i32
  }
}

module attributes {stable_mosaic.version = 11 : i64} {
  func.func @kernel(%arg0: i32, %arg1: i32, %arg2: memref<32x4xf32, #tpu.memory_space<vmem>>, %arg3: memref<32x32xf32, #tpu.memory_space<vmem>>, %arg4: memref<4x32xf32, #tpu.memory_space<vmem>>, %arg5: memref<1x32xf32, #tpu.memory_space<vmem>>, %arg6: memref<32x32xf32, #tpu.memory_space<vmem>>, %arg7: memref<1x32xf32, #tpu.memory_space<vmem>>, %arg8: memref<32x128xf32, #tpu.memory_space<vmem>>, %arg9: memref<32x128xf32, #tpu.memory_space<vmem>>) attributes {dimension_semantics = [#tpu.dimension_semantics<parallel>, #tpu.dimension_semantics<parallel>], iteration_bounds = array<i64: 1, 1>, scalar_prefetch = 0 : i64, scratch_operands = 0 : i64, tpu.core_type = #tpu.core_type<tc>, window_params = [{transform_indices = @transform_0, window_bounds = array<i64: 32, 4>}, {transform_indices = @transform_1, window_bounds = array<i64: 32, 32>}, {pipeline_mode = #tpu.pipeline_mode<synchronous>, transform_indices = @transform_2, window_bounds = array<i64: 4, 32>}, {pipeline_mode = #tpu.pipeline_mode<synchronous>, transform_indices = @transform_3, window_bounds = array<i64: 1, 32>}, {pipeline_mode = #tpu.pipeline_mode<synchronous>, transform_indices = @transform_4, window_bounds = array<i64: 32, 32>}, {pipeline_mode = #tpu.pipeline_mode<synchronous>, transform_indices = @transform_5, window_bounds = array<i64: 1, 32>}, {transform_indices = @transform_6, window_bounds = array<i64: 32, 128>}, {transform_indices = @transform_7, window_bounds = array<i64: 32, 128>}]} {
    %c0 = arith.constant 0 : index
    %c0_0 = arith.constant 0 : index
    %0 = vector.load %arg8[%c0, %c0_0] : memref<32x128xf32, #tpu.memory_space<vmem>>, vector<32x128xf32>
    %c0_1 = arith.constant 0 : index
    %c0_2 = arith.constant 0 : index
    %1 = vector.load %arg2[%c0_1, %c0_2] : memref<32x4xf32, #tpu.memory_space<vmem>>, vector<32x4xf32>
    %c0_3 = arith.constant 0 : index
    %c0_4 = arith.constant 0 : index
    %2 = vector.load %arg4[%c0_3, %c0_4] : memref<4x32xf32, #tpu.memory_space<vmem>>, vector<4x32xf32>
    %c0_5 = arith.constant 0 : index
    %c0_6 = arith.constant 0 : index
    %3 = vector.load %arg5[%c0_5, %c0_6] : memref<1x32xf32, #tpu.memory_space<vmem>>, vector<1x32xf32>
    %cst = arith.constant dense<0.000000e+00> : vector<32x32xf32>
    %4 = tpu.matmul %1, %2, %cst {dimension_numbers = #tpu.dot_dimension_numbers<[1], [0], [0], [1], [0, 0, 1, 1], [], []>} : vector<32x4xf32>, vector<4x32xf32>, vector<32x32xf32> -> vector<32x32xf32>
    %5 = vector.broadcast %3 : vector<1x32xf32> to vector<32x32xf32>
    %6 = arith.addf %4, %5 : vector<32x32xf32>
    %7 = math.tanh %6 : vector<32x32xf32>
    %c0_7 = arith.constant 0 : index
    %c0_8 = arith.constant 0 : index
    %8 = vector.load %arg6[%c0_7, %c0_8] : memref<32x32xf32, #tpu.memory_space<vmem>>, vector<32x32xf32>
    %c0_9 = arith.constant 0 : index
    %c0_10 = arith.constant 0 : index
    %9 = vector.load %arg7[%c0_9, %c0_10] : memref<1x32xf32, #tpu.memory_space<vmem>>, vector<1x32xf32>
    %cst_11 = arith.constant dense<0.000000e+00> : vector<32x32xf32>
    %10 = tpu.matmul %7, %8, %cst_11 {dimension_numbers = #tpu.dot_dimension_numbers<[1], [0], [0], [1], [0, 0, 1, 1], [], []>} : vector<32x32xf32>, vector<32x32xf32>, vector<32x32xf32> -> vector<32x32xf32>
    %11 = vector.broadcast %9 : vector<1x32xf32> to vector<32x32xf32>
    %12 = arith.addf %10, %11 : vector<32x32xf32>
    %13 = math.tanh %12 : vector<32x32xf32>
    %c0_12 = arith.constant 0 : index
    %c0_13 = arith.constant 0 : index
    %14 = vector.load %arg3[%c0_12, %c0_13] : memref<32x32xf32, #tpu.memory_space<vmem>>, vector<32x32xf32>
    %15 = arith.mulf %13, %14 : vector<32x32xf32>
    %cst_14 = arith.constant dense<0.000000e+00> : vector<32x128xf32>
    %16 = tpu.matmul %15, %0, %cst_14 {dimension_numbers = #tpu.dot_dimension_numbers<[1], [0], [0], [1], [0, 0, 1, 1], [], []>} : vector<32x32xf32>, vector<32x128xf32>, vector<32x128xf32> -> vector<32x128xf32>
    %c0_15 = arith.constant 0 : index
    %c0_16 = arith.constant 0 : index
    %17 = vector.load %arg9[%c0_15, %c0_16] : memref<32x128xf32, #tpu.memory_space<vmem>>, vector<32x128xf32>
    tpu.vector_store %arg9[%c0_15, %c0_16], %16 {strides = array<i32>} : memref<32x128xf32, #tpu.memory_space<vmem>>, vector<32x128xf32>,
    return
  }
  func.func @transform_0(%arg0: i32, %arg1: i32) -> (i32, i32) {
    %c0_i32 = arith.constant 0 : i32
    %c0_i32_0 = arith.constant 0 : i32
    return %arg0, %c0_i32 : i32, i32
  }
  func.func @transform_1(%arg0: i32, %arg1: i32) -> (i32, i32) {
    %c0_i32 = arith.constant 0 : i32
    %c0_i32_0 = arith.constant 0 : i32
    return %arg0, %c0_i32 : i32, i32
  }
  func.func @transform_2(%arg0: i32, %arg1: i32) -> (i32, i32) {
    %c0_i32 = arith.constant 0 : i32
    %c0_i32_0 = arith.constant 0 : i32
    %c0_i32_1 = arith.constant 0 : i32
    return %c0_i32, %c0_i32_0 : i32, i32
  }
  func.func @transform_3(%arg0: i32, %arg1: i32) -> (i32, i32) {
    %c0_i32 = arith.constant 0 : i32
    %c0_i32_0 = arith.constant 0 : i32
    %c0_i32_1 = arith.constant 0 : i32
    return %c0_i32, %c0_i32_0 : i32, i32
  }
  func.func @transform_4(%arg0: i32, %arg1: i32) -> (i32, i32) {
    %c0_i32 = arith.constant 0 : i32
    %c0_i32_0 = arith.constant 0 : i32
    %c0_i32_1 = arith.constant 0 : i32
    return %c0_i32, %c0_i32_0 : i32, i32
  }
  func.func @transform_5(%arg0: i32, %arg1: i32) -> (i32, i32) {
    %c0_i32 = arith.constant 0 : i32
    %c0_i32_0 = arith.constant 0 : i32
    %c0_i32_1 = arith.constant 0 : i32
    return %c0_i32, %c0_i32_0 : i32, i32
  }
  func.func @transform_6(%arg0: i32, %arg1: i32) -> (i32, i32) {
    %c0_i32 = arith.constant 0 : i32
    %c0_i32_0 = arith.constant 0 : i32
    return %c0_i32, %arg1 : i32, i32
  }
  func.func @transform_7(%arg0: i32, %arg1: i32) -> (i32, i32) {
    %c0_i32 = arith.constant 0 : i32
    return %arg0, %arg1 : i32, i32
  }
}

</mosaic_0001>

<bundles_post_ra>
// kernel: opnn_forward.3
= control target key start
LH: loop header
LB: loop body
LE: loop exit
PB: predicated region body
PF: predicated region fallthrough
CT: control target
= control target key end

     0   :  { %10 = vsyncpa [#allocation3], 0  ;;  %s277_s18 = smov [#allocation2]   ;;  %s340_s0 = inlined_call_operand.vmem [shape: f32[8,8], index: 0, kind: input, shape index: {}]   ;;  %s341_s1 = inlined_call_operand.vmem [shape: f32[8,32], index: 1, kind: input, shape index: {}]   ;;  %s342_s2 = inlined_call_operand.vmem [shape: f32[1,32], index: 2, kind: input, shape index: {}]   ;;  %s343_s3 = inlined_call_operand.hbm [shape: f32[32,32], index: 3, kind: input, shape index: {}]   ;;  %s344_s4 = inlined_call_operand.vmem [shape: f32[1,32], index: 4, kind: input, shape index: {}]   ;;  %s345_s5 = inlined_call_operand.vmem [shape: f32[8,32], index: 5, kind: output, shape index: {}]  }
   0x1   :  { %s22_s19 = sshll.u32 %s277_s18, 4  ;;  %s253_s22 = scalar_lea.hbm %s343_s3, 512  ;;  %s23_s19 = int_to_ptr.vmem [resolvable:$true] %s22_s19 }
   0x2   :  { %p254_p0 = scmp.ne.s32.totalorder %s343_s3, %s253_s22  ;;  %p257_p1 = scmp.lt.u32.totalorder %s253_s22, %s343_s3 }
   0x4   :  { %p259_p2 = pnand %p257_p1, %p254_p0 }
   0x6   :  { %262 = shalt.err (!%p259_p2)
}
   0x7   :  { %s263_s27 = scalar_lea.vmem %s23_s19, 512  ;;  %p268_p4 = scmp.lt.s32.totalorder %s23_s19, %s23_s19 }
   0x8   :  { %p264_p3 = scmp.ne.s32.totalorder %s23_s19, %s263_s27  ;;  %p269_p5 = scmp.lt.s32.totalorder %s263_s27, %s263_s27 }
   0xa   :  { %p270_p6 = por %p269_p5, %p268_p4 }
   0xc   :  { %p271_p7 = pnand %p270_p6, %p264_p3 }
   0xe   :  { %274 = shalt.err (!%p271_p7)
}
   0xf   :  { %s278_s28 = smov 128   ;;  %s279_s29 = smov 8  }
  0x10   :  { %28 = dma.hbm_to_vmem [thread:$0]  %s343_s3, 512, %s23_s19, [#allocation3], %s278_s28, %s278_s28, %s279_s29  }
  0x11   :  { %275 = dma.done.wait [#allocation3], 512  }
  0x12   :  { %276 = vsyncadd [#allocation3], 4294966784  ;;  %v280_v0 = vmov 0.0   ;;  %vm281_vm0 = vmmov 0   ;;  %vm43_vm1 = vcmask 64512   ;;  %v35_v1 = vld [vmem:[%s341_s1] sm:$0xff] }
  0x13   :  { %221 = vmatprep.subr.mxu0 %v280_v0  ;;  %223 = vmatprep.mubr.msk.f32.mxu0 %vm281_vm0, %v280_v0  ;;  %v34_v2 = vld [vmem:[%s340_s0] sm:$0xff]  ;;  %v119_v4 = vld [vmem:[#allocation2 + $0x8] sm:$0xff]  ;;  %v120_v5 = vld [vmem:[#allocation2 + $0x10] sm:$0xff]  ;;  %v282_v6 = vmov 0.0|0.0   ;;  %vm129_vm2 = vcmask 261120  }
  0x14   :  { %234 = vmatprep.mubr.msk.f32.mxu1 %vm281_vm0, %v280_v0  ;;  %222 = vmatpush3.msra.mxu0 %v35_v1  ;;  %v118_v3 = vld [vmem:[#allocation2] sm:$0xff]  ;;  %v121_v8 = vld [vmem:[#allocation2 + $0x18] sm:$0xff] }
  0x15   :  { %224 = vmatmul.mubr.msk.f32.vlgmr.msra.gmra.mrb[0].mxu0 %vm43_vm1, %v34_v2  ;;  %237 = vmatprep.subr.bf16.mxu1 %v282_v6  ;;  %v238_v7 = vpack.c.bf16 %v119_v4, %v118_v3  ;;  %v241_v9 = vpack.c.bf16 %v121_v8, %v120_v5  ;;  %v210_v10 = vld [vmem:[%s342_s2] ss:$0 sm:$0xff] }
  0x16   :  { %v212_v15 = vld [vmem:[%s344_s4] ss:$0 sm:$0xff] }
  0x17   :  { %239 = vmatpush3.bf16.msra.mxu1 %v238_v7 }
  0x18   :  { %240 = vmatprep.subr.bf16.mxu1 %v282_v6 }
  0x1b   :  { %242 = vmatpush3.bf16.msra.mxu1 %v241_v9 }
  0xe8   :  { %v113_v11 = vpop.f32.mrb[0].mxu0 }
  0xe9   :  { %v114_v12 = vadd.f32 %v210_v10, %v113_v11  ;;  %v225_v13 = vpop.f32.mrb[1].mxu0 }
  0xeb   :  { %249 = vtanh.f32 %v114_v12 }
  0xf5   :  { %v250_v14 = vpop.eup %249 }
  0xf6   :  { %235 = vmatmul.mubr.msk.f32.vlgmr.msra.gmra.mrb[0].mxu1 %vm129_vm2, %v250_v14 }
 0x1c9   :  { %v199_v16 = vpop.f32.mrb[0].mxu1 }
 0x1ca   :  { %v200_v17 = vadd.f32 %v212_v15, %v199_v16  ;;  %v236_v18 = vpop.f32.mrb[1].mxu1 }
 0x1cc   :  { %251 = vtanh.f32 %v200_v17 }
 0x1d6   :  { %v252_v19 = vpop.eup %251 }
 0x1d7   :  { %204 = vst.msk [vmem:[%s345_s5] sm:$0xff] %vm129_vm2, %v252_v19 }
 0x1d8   :  { %209 = vsyncpa [#allocation3], 1 }

// kernel: opnn_forward.4
= control target key start
LH: loop header
LB: loop body
LE: loop exit
PB: predicated region body
PF: predicated region fallthrough
CT: control target
= control target key end

     0   :  { %vm37_vm0 = vcmask 1041408   ;;  %vm30_vm1 = vcmask 15360   ;;  %vm129_vm2 = vcmask 261120   ;;  %s334_s1 = inlined_call_operand.vmem [shape: f32[2,32], index: 1, kind: input, shape index: {}]   ;;  %s335_s0 = inlined_call_operand.vmem [shape: f32[16,2], index: 0, kind: input, shape index: {}]   ;;  %s336_s3 = inlined_call_operand.vmem [shape: f32[32,32], index: 3, kind: input, shape index: {}]   ;;  %s337_s2 = inlined_call_operand.vmem [shape: f32[1,32], index: 2, kind: input, shape index: {}]   ;;  %s338_s4 = inlined_call_operand.vmem [shape: f32[1,32], index: 4, kind: input, shape index: {}]   ;;  %s339_s5 = inlined_call_operand.vmem [shape: f32[16,32], index: 5, kind: output, shape index: {}]  }
   0x1   :  { %v22_v0 = vld [vmem:[%s334_s1] sm:$0x3]  ;;  %v21_v2 = vld [vmem:[%s335_s0 + $0x8] sm:$0xff]  ;;  %v120_v5 = vld [vmem:[%s336_s3 + $0x10] sm:$0xff] }
   0x2   :  { %v20_v1 = vld [vmem:[%s335_s0] sm:$0xff]  ;;  %235 = vmatprep.subr.msk.mxu0 %vm37_vm0, %v22_v0  ;;  %v119_v4 = vld [vmem:[%s336_s3 + $0x8] sm:$0xff]  ;;  %v121_v7 = vld [vmem:[%s336_s3 + $0x18] sm:$0xff] }
   0x3   :  { %237 = vmatprep.mubr.msk.f32.mxu0 %vm30_vm1, %v20_v1  ;;  %236 = vmatpush3.msk.msra.mxu0 %vm37_vm0, %v22_v0  ;;  %v118_v3 = vld [vmem:[%s336_s3] sm:$0xff]  ;;  %v255_v8 = vpack.c.bf16 %v121_v7, %v120_v5 }
   0x4   :  { %238 = vmatmul.mubr.msk.f32.vlgmr.msra.gmra.mrb[0].mxu0 %vm30_vm1, %v21_v2  ;;  %v251_v6 = vpack.c.bf16 %v119_v4, %v118_v3  ;;  %v219_v9 = vld [vmem:[%s337_s2] ss:$0 sm:$0xff] }
   0x5   :  { %v223_v16 = vld [vmem:[%s338_s4] ss:$0 sm:$0xff] }
   0x6   :  { %252 = vmatprep.subr.bf16.mxu1 %v251_v6 }
   0x7   :  { %254 = vmatpush3.bf16.msra.mxu1 %v251_v6 }
   0x8   :  { %256 = vmatprep.subr.bf16.mxu1 %v255_v8 }
   0xb   :  { %258 = vmatpush3.bf16.msra.mxu1 %v255_v8 }
  0xd7   :  { %v239_v10 = vpop.f32.mrb[0].mxu0 }
  0xd8   :  { %v113_v11 = vadd.f32 %v239_v10, %v219_v9  ;;  %v107_v12 = vpop.f32.mrb[1].mxu0 }
  0xd9   :  { %v108_v13 = vadd.f32 %v219_v9, %v107_v12 }
  0xdb   :  { %259 = vtanh.f32 %v108_v13 }
  0xdc   :  { %261 = vtanh.f32 %v113_v11 }
  0xe5   :  { %v260_v14 = vpop.eup %259 }
  0xe6   :  { %v262_v15 = vpop.eup %261  ;;  %248 = vmatprep.mubr.msk.f32.mxu1 %vm129_vm2, %v260_v14 }
  0xe7   :  { %249 = vmatmul.mubr.msk.f32.vlgmr.msra.gmra.mrb[0].mxu1 %vm129_vm2, %v262_v15 }
 0x1ba   :  { %v250_v17 = vpop.f32.mrb[0].mxu1 }
 0x1bb   :  { %v208_v18 = vadd.f32 %v250_v17, %v223_v16  ;;  %v202_v19 = vpop.f32.mrb[1].mxu1 }
 0x1bc   :  { %v203_v20 = vadd.f32 %v223_v16, %v202_v19 }
 0x1bd   :  { %263 = vtanh.f32 %v208_v18 }
 0x1be   :  { %265 = vtanh.f32 %v203_v20 }
 0x1c7   :  { %v264_v21 = vpop.eup %263 }
 0x1c8   :  { %v266_v22 = vpop.eup %265  ;;  %214 = vst.msk [vmem:[%s339_s5 + $0x8] sm:$0xff] %vm129_vm2, %v264_v21 }
 0x1c9   :  { %213 = vst.msk [vmem:[%s339_s5] sm:$0xff] %vm129_vm2, %v266_v22 }

// kernel: opnn_forward.5
= control target key start
LH: loop header
LB: loop body
LE: loop exit
PB: predicated region body
PF: predicated region fallthrough
CT: control target
= control target key end

     0   :  { %vm55_vm0 = vcmask 1043456   ;;  %vm42_vm1 = vcmask 31744   ;;  %vm159_vm2 = vcmask 261120   ;;  %s595_s2 = inlined_call_operand.vmem [shape: f32[4,32], index: 2, kind: input, shape index: {}]   ;;  %s596_s0 = inlined_call_operand.vmem [shape: f32[32,4], index: 0, kind: input, shape index: {}]   ;;  %s597_s4 = inlined_call_operand.vmem [shape: f32[32,32], index: 4, kind: input, shape index: {}]   ;;  %s598_s3 = inlined_call_operand.vmem [shape: f32[1,32], index: 3, kind: input, shape index: {}]   ;;  %s599_s6 = inlined_call_operand.vmem [shape: f32[32,128], index: 6, kind: input, shape index: {}]   ;;  %s600_s5 = inlined_call_operand.vmem [shape: f32[1,32], index: 5, kind: input, shape index: {}]   ;;  %s601_s1 = inlined_call_operand.vmem [shape: f32[32,32], index: 1, kind: input, shape index: {}]   ;;  %s602_s7 = inlined_call_operand.vmem [shape: f32[32,128], index: 7, kind: output, shape index: {}]  }
   0x1   :  { %v34_v0 = vld [vmem:[%s595_s2] sm:$0xf]  ;;  %v31_v2 = vld [vmem:[%s596_s0 + $0x8] sm:$0xff]  ;;  %v32_v3 = vld [vmem:[%s596_s0 + $0x10] sm:$0xff] }
   0x2   :  { %v30_v1 = vld [vmem:[%s596_s0] sm:$0xff]  ;;  %410 = vmatprep.subr.msk.mxu0 %vm55_vm0, %v34_v0  ;;  %v33_v4 = vld [vmem:[%s596_s0 + $0x18] sm:$0xff]  ;;  %v149_v6 = vld [vmem:[%s597_s4 + $0x8] sm:$0xff] }
   0x3   :  { %412 = vmatprep.mubr.msk.f32.mxu0 %vm42_vm1, %v30_v1  ;;  %411 = vmatpush3.msk.msra.mxu0 %vm55_vm0, %v34_v0  ;;  %v148_v5 = vld [vmem:[%s597_s4] sm:$0xff]  ;;  %v150_v8 = vld [vmem:[%s597_s4 + $0x10] sm:$0xff]  ;;  %v151_v9 = vld [vmem:[%s597_s4 + $0x18] sm:$0xff] }
   0x4   :  { %413 = vmatmul.mubr.msk.f32.vlgmr.msra.gmra.mrb[0].mxu0 %vm42_vm1, %v31_v2  ;;  %v446_v7 = vpack.c.bf16 %v149_v6, %v148_v5  ;;  %v450_v10 = vpack.c.bf16 %v151_v9, %v150_v8  ;;  %v374_v11 = vld [vmem:[%s598_s3] ss:$0 sm:$0xff]  ;;  %v27_v25 = vld [vmem:[%s599_s6 + $0x8] sm:$0xff]  ;;  %v28_v27 = vld [vmem:[%s599_s6 + $0x10] sm:$0xff] }
   0x5   :  { %415 = vmatprep.mubr.msk.f32.mxu0 %vm42_vm1, %v32_v3  ;;  %v26_v24 = vld [vmem:[%s599_s6] sm:$0xff]  ;;  %v29_v28 = vld [vmem:[%s599_s6 + $0x18] sm:$0xff]  ;;  %v262_v41 = vld [vmem:[%s601_s1 + $0x8] sm:$0xff] }
   0x6   :  { %447 = vmatprep.subr.bf16.mxu1 %v446_v7  ;;  %v454_v26 = vpack.c.bf16 %v27_v25, %v26_v24  ;;  %v458_v29 = vpack.c.bf16 %v29_v28, %v28_v27  ;;  %v380_v30 = vld [vmem:[%s600_s5] ss:$0 sm:$0xff]  ;;  %v263_v45 = vld [vmem:[%s601_s1 + $0x10] sm:$0xff]  ;;  %v264_v47 = vld [vmem:[%s601_s1 + $0x18] sm:$0xff] }
   0x7   :  { %449 = vmatpush3.bf16.msra.mxu1 %v446_v7  ;;  %v261_v39 = vld [vmem:[%s601_s1] sm:$0xff] }
   0x8   :  { %416 = vmatmul.mubr.msk.f32.gmra.mrb[2].mxu0 %vm42_vm1, %v33_v4  ;;  %451 = vmatprep.subr.bf16.mxu1 %v450_v10 }
   0x9   :  { %455 = vmatprep.subr.bf16.mxu0 %v454_v26 }
   0xa   :  { %457 = vmatpush3.bf16.msra.mxu0 %v454_v26 }
   0xb   :  { %453 = vmatpush3.bf16.msra.mxu1 %v450_v10  ;;  %459 = vmatprep.subr.bf16.mxu0 %v458_v29 }
   0xe   :  { %461 = vmatpush3.bf16.msra.mxu0 %v458_v29 }
  0xd7   :  { %v414_v12 = vpop.f32.mrb[0].mxu0 }
  0xd8   :  { %v131_v13 = vadd.f32 %v414_v12, %v374_v11  ;;  %v125_v14 = vpop.f32.mrb[1].mxu0 }
  0xd9   :  { %v126_v15 = vadd.f32 %v374_v11, %v125_v14 }
  0xdb   :  { %462 = vtanh.f32 %v126_v15  ;;  %v417_v16 = vpop.f32.mrb[2].mxu0 }
  0xdc   :  { %464 = vtanh.f32 %v131_v13  ;;  %v141_v17 = vadd.f32 %v417_v16, %v374_v11  ;;  %v135_v18 = vpop.f32.mrb[3].mxu0 }
  0xdd   :  { %v136_v19 = vadd.f32 %v374_v11, %v135_v18 }
  0xdf   :  { %466 = vtanh.f32 %v136_v19 }
  0xe0   :  { %468 = vtanh.f32 %v141_v17 }
  0xe5   :  { %v463_v20 = vpop.eup %462 }
  0xe6   :  { %v465_v21 = vpop.eup %464  ;;  %426 = vmatprep.mubr.msk.f32.mxu1 %vm159_vm2, %v463_v20 }
  0xe7   :  { %427 = vmatmul.mubr.msk.f32.vlgmr.msra.gmra.mrb[0].mxu1 %vm159_vm2, %v465_v21 }
  0xe9   :  { %v467_v22 = vpop.eup %466 }
  0xea   :  { %v469_v23 = vpop.eup %468  ;;  %429 = vmatprep.mubr.msk.f32.mxu1 %vm159_vm2, %v467_v22 }
  0xeb   :  { %430 = vmatmul.mubr.msk.f32.gmra.mrb[2].mxu1 %vm159_vm2, %v469_v23 }
 0x1ba   :  { %v428_v31 = vpop.f32.mrb[0].mxu1 }
 0x1bb   :  { %v244_v32 = vadd.f32 %v428_v31, %v380_v30  ;;  %v238_v33 = vpop.f32.mrb[1].mxu1 }
 0x1bc   :  { %v239_v34 = vadd.f32 %v380_v30, %v238_v33 }
 0x1bd   :  { %470 = vtanh.f32 %v244_v32 }
 0x1be   :  { %472 = vtanh.f32 %v239_v34  ;;  %v431_v35 = vpop.f32.mrb[2].mxu1 }
 0x1bf   :  { %v254_v36 = vadd.f32 %v431_v35, %v380_v30  ;;  %v248_v37 = vpop.f32.mrb[3].mxu1 }
 0x1c0   :  { %v249_v38 = vadd.f32 %v380_v30, %v248_v37 }
 0x1c1   :  { %474 = vtanh.f32 %v254_v36 }
 0x1c2   :  { %476 = vtanh.f32 %v249_v38 }
 0x1c7   :  { %v471_v40 = vpop.eup %470 }
 0x1c8   :  { %v473_v42 = vpop.eup %472  ;;  %v266_v44 = vmul.f32 %v471_v40, %v262_v41 }
 0x1c9   :  { %v265_v43 = vmul.f32 %v473_v42, %v261_v39 }
 0x1cb   :  { %v475_v46 = vpop.eup %474  ;;  %440 = vmatprep.mubr.msk.f32.mxu0 %vm159_vm2, %v265_v43 }
 0x1cc   :  { %v477_v48 = vpop.eup %476  ;;  %441 = vmatmul.mubr.msk.f32.vlgmr.msra.gmra.mrb[4].mxu0 %vm159_vm2, %v266_v44  ;;  %v268_v50 = vmul.f32 %v475_v46, %v264_v47 }
 0x1cd   :  { %v267_v49 = vmul.f32 %v477_v48, %v263_v45 }
 0x1cf   :  { %443 = vmatprep.mubr.msk.f32.mxu0 %vm159_vm2, %v267_v49 }
 0x1d0   :  { %444 = vmatmul.mubr.msk.f32.gmra.mrb[6].mxu0 %vm159_vm2, %v268_v50 }
 0x29f   :  { %v442_v51 = vpop.f32.mrb[4].mxu0 }
 0x2a0   :  { %367 = vst [vmem:[%s602_s7 + $0x8] sm:$0xff] %v442_v51  ;;  %v347_v52 = vpop.f32.mrb[5].mxu0 }
 0x2a1   :  { %366 = vst [vmem:[%s602_s7] sm:$0xff] %v347_v52 }
 0x2a3   :  { %v445_v53 = vpop.f32.mrb[6].mxu0 }
 0x2a4   :  { %369 = vst [vmem:[%s602_s7 + $0x18] sm:$0xff] %v445_v53  ;;  %v357_v54 = vpop.f32.mrb[7].mxu0 }
 0x2a5   :  { %368 = vst [vmem:[%s602_s7 + $0x10] sm:$0xff] %v357_v54 }

</bundles_post_ra>
